<compile_context>
chip_gen: v7x
topology: tpu7x:2x2x1
jax: 0.10.0
libtpu: 0.0.40
codegen_flags: <defaults>
</compile_context>

<pallas_src>
import numpy as np
import jax
import jax.numpy as jnp
from jax.experimental import pallas as pl
from jax.experimental.pallas import tpu as pltpu


def _round_up(x, m):
    return ((x + m - 1) // m) * m


def adjacency_conv_kernel(seq_ref, adj_cat_ref, adj_even_ref, w_ref, out_ref,
                          acc_e_ref, acc_o_ref):
    # seq_ref:      (TB, C_in_p, L_p)       batch block, k-invariant (not re-DMA'd over k)
    # adj_cat_ref:  (L_p, 2*TMH)            [even tile k | odd tile k] of adj.T
    # adj_even_ref: (TMH, L_p)              tile k of adj[0::2, :]
    # w_ref:        (C_out_p, 2*C_in_p)     [w0 | w1] (conv taps, fused)
    # out_ref:      (TB, C_out_p, L_p)
    # acc_e_ref / acc_o_ref: (TB*C_in_p, L_p) f32 accumulators over the Mh axis
    k = pl.program_id(1)
    nk = pl.num_programs(1)
    tb, c_in_p, l_p = seq_ref.shape
    tmh = adj_even_ref.shape[0]

    @pl.when(k == 0)
    def _init():
        acc_e_ref[...] = jnp.zeros_like(acc_e_ref)
        acc_o_ref[...] = jnp.zeros_like(acc_o_ref)

    # Stage 1 (fused even/odd): one wide matmul, K = L_p.
    seq2d = seq_ref[...].reshape(tb * c_in_p, l_p)       # free reshape (C_in_p % 8 == 0)
    x = jnp.dot(seq2d, adj_cat_ref[...],
                preferred_element_type=jnp.float32)      # (TB*C_in_p, 2*TMH)

    # Stage 2 (projection back to L), contraction K = TMH; accumulate over Mh tiles.
    a_even = adj_even_ref[...]
    x_e = x[:, :tmh].astype(a_even.dtype)                # lane-aligned slice (TMH % 128 == 0)
    x_o = x[:, tmh:].astype(a_even.dtype)
    acc_e_ref[...] += jnp.dot(x_e, a_even, preferred_element_type=jnp.float32)
    acc_o_ref[...] += jnp.dot(x_o, a_even, preferred_element_type=jnp.float32)

    # Epilogue (once per batch block): fused conv-tap channel mix.
    @pl.when(k == nk - 1)
    def _finalize():
        w_cat = w_ref[...]                               # (C_out_p, 2*C_in_p)
        for b in range(tb):                              # static unrolled loop
            xe = acc_e_ref[b * c_in_p:(b + 1) * c_in_p, :].astype(w_cat.dtype)
            xo = acc_o_ref[b * c_in_p:(b + 1) * c_in_p, :].astype(w_cat.dtype)
            xcat = jnp.concatenate([xe, xo], axis=0)     # (2*C_in_p, L_p), compute dtype
            out_ref[b] = jnp.dot(w_cat, xcat,
                                 preferred_element_type=jnp.float32
                                 ).astype(out_ref.dtype)


def adjacency_conv(seq, adj, weight, *, tb=None, tmh_max=512,
                   compute_dtype=jnp.bfloat16, vmem_budget_bytes=40 << 20):
    """seq: (N, C_in, L), adj: (M, L) with M even, weight: (C_out, C_in, 2)."""
    N, C_in, L = seq.shape
    M, L2 = adj.shape
    assert L == L2 and M % 2 == 0
    C_out, C_in_w, ksz = weight.shape
    assert C_in_w == C_in and ksz == 2
    Mh = M // 2
    out_dtype = seq.dtype
    cdt = compute_dtype
    cbytes = jnp.dtype(cdt).itemsize
    obytes = jnp.dtype(out_dtype).itemsize

    # ---- tile / padding choices (all lane/sublane aligned) -------------------
    C_in_p = _round_up(C_in, 8)
    C_out_p = _round_up(C_out, 8)
    L_p = _round_up(L, 128)               # lane-dense output stores
    Mh_p0 = _round_up(Mh, 128)

    if tb is None:
        tb = max(1, min(8, N // 2))       # keep >=2 parallel grid steps when N>=2
    tb = max(1, min(tb, N))
    tmh = min(_round_up(tmh_max, 128), Mh_p0)

    def vmem_est(tb_, tmh_):
        seq_blk = 2 * tb_ * C_in_p * L_p * cbytes         # double-buffered input
        adj_cat_blk = 2 * L_p * 2 * tmh_ * cbytes
        adj_even_blk = 2 * tmh_ * L_p * cbytes
        w_blk = 2 * C_out_p * 2 * C_in_p * cbytes
        out_blk = 2 * tb_ * C_out_p * L_p * obytes
        acc = 2 * tb_ * C_in_p * L_p * 4                  # two f32 accumulators
        return seq_blk + adj_cat_blk + adj_even_blk + w_blk + out_blk + acc

    # Shrink batch tile first (keeps hot-loop K tiles big), then the Mh tile.
    while tb > 1 and vmem_est(tb, tmh) > vmem_budget_bytes:
        tb = max(1, tb // 2)
    while tmh > 128 and vmem_est(tb, tmh) > vmem_budget_bytes:
        tmh = max(128, tmh // 2)

    N_p = _round_up(N, tb)
    Mh_p = _round_up(Mh_p0, tmh)
    nk = Mh_p // tmh
    vmem_limit = int(min(56 << 20, max(32 << 20, int(vmem_est(tb, tmh) * 1.3))))

    # ---- operand prep (glue JAX): pad, cast to compute dtype, split taps -----
    seq_p = jnp.zeros((N_p, C_in_p, L_p), cdt).at[:N, :C_in, :L].set(seq.astype(cdt))

    adj_even = adj[0::2, :]
    adj_odd = adj[1::2, :]
    adj_even_p = jnp.zeros((Mh_p, L_p), cdt).at[:Mh, :L].set(adj_even.astype(cdt))
    adj_odd_p = jnp.zeros((Mh_p, L_p), cdt).at[:Mh, :L].set(adj_odd.astype(cdt))

    # adj_cat: per-k tile layout [even tile k | odd tile k], shape (L_p, 2*Mh_p).
    ev_t = adj_even_p.T.reshape(L_p, nk, tmh)
    od_t = adj_odd_p.T.reshape(L_p, nk, tmh)
    adj_cat = jnp.stack([ev_t, od_t], axis=2).reshape(L_p, nk * 2 * tmh)

    # Fused conv taps: W_cat = [w0 | w1] on padded channel axes.
    w_cat = jnp.zeros((C_out_p, 2 * C_in_p), cdt)
    w_cat = w_cat.at[:C_out, :C_in].set(weight[:, :, 0].astype(cdt))
    w_cat = w_cat.at[:C_out, C_in_p:C_in_p + C_in].set(weight[:, :, 1].astype(cdt))

    out_p = pl.pallas_call(
        adjacency_conv_kernel,
        out_shape=jax.ShapeDtypeStruct((N_p, C_out_p, L_p), out_dtype),
        grid_spec=pltpu.PrefetchScalarGridSpec(
            num_scalar_prefetch=0,
            grid=(N_p // tb, nk),
            in_specs=[
                pl.BlockSpec((tb, C_in_p, L_p), lambda n, k: (n, 0, 0)),  # seq
                pl.BlockSpec((L_p, 2 * tmh), lambda n, k: (0, k)),        # adj_cat tile
                pl.BlockSpec((tmh, L_p), lambda n, k: (k, 0)),            # adj_even tile
                pl.BlockSpec((C_out_p, 2 * C_in_p), lambda n, k: (0, 0)), # W_cat
            ],
            out_specs=pl.BlockSpec((tb, C_out_p, L_p), lambda n, k: (n, 0, 0)),
            scratch_shapes=[
                pltpu.VMEM((tb * C_in_p, L_p), jnp.float32),   # even accumulator
                pltpu.VMEM((tb * C_in_p, L_p), jnp.float32),   # odd accumulator
            ],
        ),
        compiler_params=pltpu.CompilerParams(
            dimension_semantics=("parallel", "arbitrary"),
            vmem_limit_bytes=vmem_limit),
    )(seq_p, adj_cat, adj_even_p, w_cat)

    return out_p[:N, :C_out, :L]


def adjacency_conv_reference(seq, adj, weight):
    """Pure-JAX reference reproducing the PyTorch forward exactly (f32)."""
    N, C_in, L = seq.shape
    M = adj.shape[0]
    x = jnp.einsum("ncl,ml->ncm", seq, adj)                  # seq @ adj.T
    x_pairs = x.reshape(N, C_in, M // 2, 2)                  # stride-2, k=2 windows
    y = jnp.einsum("oik,nijk->noj", weight, x_pairs)         # Conv1d(k=2, s=2, no bias)
    return jnp.einsum("noj,jl->nol", y, adj[0::2, :])        # x @ adj[::2, :]


if __name__ == "__main__":
    # Small deterministic shapes consistent with the module's forward.
    N, C_in, C_out, L, M = 2, 4, 8, 16, 8   # M even (conv stride 2)

    key = jax.random.PRNGKey(0)
    k_seq, k_adj, k_w = jax.random.split(key, 3)
    seq = jax.random.normal(k_seq, (N, C_in, L), dtype=jnp.float32)
    adj = jax.random.normal(k_adj, (M, L), dtype=jnp.float32)
    # Deterministic synthetic Conv1d weight (C_out, C_in, kernel_size=2), bias=False.
    weight = jax.random.normal(k_w, (C_out, C_in, 2), dtype=jnp.float32) * 0.1

    ref = adjacency_conv_reference(seq, adj, weight)

    # Exact path: f32 operands, f32 accumulation.
    out_f32 = jax.block_until_ready(
        adjacency_conv(seq, adj, weight, compute_dtype=jnp.float32))
    np.testing.assert_allclose(np.asarray(out_f32), np.asarray(ref),
                               rtol=1e-4, atol=1e-4)

    # Fast path (default): bf16 operands on the MXU, f32 accumulation.
    out_bf16 = jax.block_until_ready(adjacency_conv(seq, adj, weight))
    np.testing.assert_allclose(np.asarray(out_bf16), np.asarray(ref),
                               rtol=5e-2, atol=5e-2)

    print("KERNEL_OK")
</pallas_src>

<mosaic_0001>
module attributes {stable_mosaic.version = 11 : i64} {
  func.func @adjacency_conv_kernel(%arg0: i32, %arg1: i32, %arg2: memref<1x8x128xf32, #tpu.memory_space<vmem>>, %arg3: memref<128x256xf32, #tpu.memory_space<vmem>>, %arg4: memref<128x128xf32, #tpu.memory_space<vmem>>, %arg5: memref<8x16xf32, #tpu.memory_space<vmem>>, %arg6: memref<1x8x128xf32, #tpu.memory_space<vmem>>, %arg7: memref<8x128xf32, #tpu.memory_space<vmem>>, %arg8: memref<8x128xf32, #tpu.memory_space<vmem>>) attributes {dimension_semantics = [#tpu.dimension_semantics<parallel>, #tpu.dimension_semantics<arbitrary>], iteration_bounds = array<i64: 2, 1>, scalar_prefetch = 0 : i64, scratch_operands = 2 : i64, tpu.core_type = #tpu.core_type<tc>, window_params = [{transform_indices = @transform_0, window_bounds = array<i64: 1, 8, 128>}, {transform_indices = @transform_1, window_bounds = array<i64: 128, 256>}, {transform_indices = @transform_2, window_bounds = array<i64: 128, 128>}, {pipeline_mode = #tpu.pipeline_mode<synchronous>, transform_indices = @transform_3, window_bounds = array<i64: 8, 16>}, {transform_indices = @transform_4, window_bounds = array<i64: 1, 8, 128>}]} {
    %c0_i32 = arith.constant 0 : i32
    %0 = arith.cmpi eq, %arg1, %c0_i32 : i32
    %1 = arith.extui %0 : i1 to i32
    %c0_i32_0 = arith.constant 0 : i32
    %2 = arith.cmpi ne, %1, %c0_i32_0 : i32
    scf.if %2 {
      %cst_19 = arith.constant 0.000000e+00 : f32
      %21 = vector.broadcast %cst_19 : f32 to vector<8x128xf32>
      %c0_20 = arith.constant 0 : index
      %c0_21 = arith.constant 0 : index
      %22 = vector.load %arg7[%c0_20, %c0_21] : memref<8x128xf32, #tpu.memory_space<vmem>>, vector<8x128xf32>
      tpu.vector_store %arg7[%c0_20, %c0_21], %21 {strides = array<i32>} : memref<8x128xf32, #tpu.memory_space<vmem>>, vector<8x128xf32>,
      %cst_22 = arith.constant 0.000000e+00 : f32
      %23 = vector.broadcast %cst_22 : f32 to vector<8x128xf32>
      %c0_23 = arith.constant 0 : index
      %c0_24 = arith.constant 0 : index
      %24 = vector.load %arg8[%c0_23, %c0_24] : memref<8x128xf32, #tpu.memory_space<vmem>>, vector<8x128xf32>
      tpu.vector_store %arg8[%c0_23, %c0_24], %23 {strides = array<i32>} : memref<8x128xf32, #tpu.memory_space<vmem>>, vector<8x128xf32>,
    } else {
    }
    %c0 = arith.constant 0 : index
    %c0_1 = arith.constant 0 : index
    %c0_2 = arith.constant 0 : index
    %3 = vector.load %arg2[%c0, %c0_1, %c0_2] : memref<1x8x128xf32, #tpu.memory_space<vmem>>, vector<1x8x128xf32>
    %4 = vector.shape_cast %3 : vector<1x8x128xf32> to vector<8x128xf32>
    %c0_3 = arith.constant 0 : index
    %c0_4 = arith.constant 0 : index
    %5 = vector.load %arg3[%c0_3, %c0_4] : memref<128x256xf32, #tpu.memory_space<vmem>>, vector<128x256xf32>
    %cst = arith.constant dense<0.000000e+00> : vector<8x256xf32>
    %6 = tpu.matmul %4, %5, %cst {dimension_numbers = #tpu.dot_dimension_numbers<[1], [0], [0], [1], [0, 0, 1, 1], [], []>} : vector<8x128xf32>, vector<128x256xf32>, vector<8x256xf32> -> vector<8x256xf32>
    %c0_5 = arith.constant 0 : index
    %c0_6 = arith.constant 0 : index
    %7 = vector.load %arg4[%c0_5, %c0_6] : memref<128x128xf32, #tpu.memory_space<vmem>>, vector<128x128xf32>
    %8 = vector.extract_strided_slice %6 {offsets = [0, 0], sizes = [8, 128], strides = [1, 1]} : vector<8x256xf32> to vector<8x128xf32>
    %9 = vector.extract_strided_slice %6 {offsets = [0, 128], sizes = [8, 128], strides = [1, 1]} : vector<8x256xf32> to vector<8x128xf32>
    %c0_7 = arith.constant 0 : index
    %c0_8 = arith.constant 0 : index
    %10 = vector.load %arg7[%c0_7, %c0_8] : memref<8x128xf32, #tpu.memory_space<vmem>>, vector<8x128xf32>
    %cst_9 = arith.constant dense<0.000000e+00> : vector<8x128xf32>
    %11 = tpu.matmul %8, %7, %cst_9 {dimension_numbers = #tpu.dot_dimension_numbers<[1], [0], [0], [1], [0, 0, 1, 1], [], []>} : vector<8x128xf32>, vector<128x128xf32>, vector<8x128xf32> -> vector<8x128xf32>
    %12 = arith.addf %10, %11 : vector<8x128xf32>
    %c0_10 = arith.constant 0 : index
    %c0_11 = arith.constant 0 : index
    %13 = vector.load %arg7[%c0_10, %c0_11] : memref<8x128xf32, #tpu.memory_space<vmem>>, vector<8x128xf32>
    tpu.vector_store %arg7[%c0_10, %c0_11], %12 {strides = array<i32>} : memref<8x128xf32, #tpu.memory_space<vmem>>, vector<8x128xf32>,
    %c0_12 = arith.constant 0 : index
    %c0_13 = arith.constant 0 : index
    %14 = vector.load %arg8[%c0_12, %c0_13] : memref<8x128xf32, #tpu.memory_space<vmem>>, vector<8x128xf32>
    %cst_14 = arith.constant dense<0.000000e+00> : vector<8x128xf32>
    %15 = tpu.matmul %9, %7, %cst_14 {dimension_numbers = #tpu.dot_dimension_numbers<[1], [0], [0], [1], [0, 0, 1, 1], [], []>} : vector<8x128xf32>, vector<128x128xf32>, vector<8x128xf32> -> vector<8x128xf32>
    %16 = arith.addf %14, %15 : vector<8x128xf32>
    %c0_15 = arith.constant 0 : index
    %c0_16 = arith.constant 0 : index
    %17 = vector.load %arg8[%c0_15, %c0_16] : memref<8x128xf32, #tpu.memory_space<vmem>>, vector<8x128xf32>
    tpu.vector_store %arg8[%c0_15, %c0_16], %16 {strides = array<i32>} : memref<8x128xf32, #tpu.memory_space<vmem>>, vector<8x128xf32>,
    %c0_i32_17 = arith.constant 0 : i32
    %18 = arith.cmpi eq, %arg1, %c0_i32_17 : i32
    %19 = arith.extui %18 : i1 to i32
    %c0_i32_18 = arith.constant 0 : i32
    %20 = arith.cmpi ne, %19, %c0_i32_18 : i32
    scf.if %20 {
      %c0_19 = arith.constant 0 : index
      %c0_20 = arith.constant 0 : index
      %21 = vector.load %arg5[%c0_19, %c0_20] : memref<8x16xf32, #tpu.memory_space<vmem>>, vector<8x16xf32>
      %c0_21 = arith.constant 0 : index
      %c0_22 = arith.constant 0 : index
      %22 = vector.load %arg7[%c0_21, %c0_22] : memref<8x128xf32, #tpu.memory_space<vmem>>, vector<8x128xf32>
      %c0_23 = arith.constant 0 : index
      %c0_24 = arith.constant 0 : index
      %23 = vector.load %arg8[%c0_23, %c0_24] : memref<8x128xf32, #tpu.memory_space<vmem>>, vector<8x128xf32>
      %24 = tpu.concatenate %22, %23 in 0 : vector<8x128xf32>, vector<8x128xf32> -> vector<16x128xf32>
      %cst_25 = arith.constant dense<0.000000e+00> : vector<8x128xf32>
      %25 = tpu.matmul %21, %24, %cst_25 {dimension_numbers = #tpu.dot_dimension_numbers<[1], [0], [0], [1], [0, 0, 1, 1], [], []>} : vector<8x16xf32>, vector<16x128xf32>, vector<8x128xf32> -> vector<8x128xf32>
      %c0_26 = arith.constant 0 : index
      %c0_27 = arith.constant 0 : index
      %c0_28 = arith.constant 0 : index
      %26 = vector.load %arg6[%c0_26, %c0_27, %c0_28] : memref<1x8x128xf32, #tpu.memory_space<vmem>>, vector<1x8x128xf32>
      %27 = vector.shape_cast %26 : vector<1x8x128xf32> to vector<8x128xf32>
      %28 = vector.shape_cast %25 : vector<8x128xf32> to vector<1x8x128xf32>
      tpu.vector_store %arg6[%c0_26, %c0_27, %c0_28], %28 {strides = array<i32>} : memref<1x8x128xf32, #tpu.memory_space<vmem>>, vector<1x8x128xf32>,
    } else {
    }
    return
  }
  func.func @transform_0(%arg0: i32, %arg1: i32) -> (i32, i32, i32) {
    %c0_i32 = arith.constant 0 : i32
    %c0_i32_0 = arith.constant 0 : i32
    %c0_i32_1 = arith.constant 0 : i32
    return %arg0, %c0_i32, %c0_i32_0 : i32, i32, i32
  }
  func.func @transform_1(%arg0: i32, %arg1: i32) -> (i32, i32) {
    %c0_i32 = arith.constant 0 : i32
    %c0_i32_0 = arith.constant 0 : i32
    return %c0_i32, %arg1 : i32, i32
  }
  func.func @transform_2(%arg0: i32, %arg1: i32) -> (i32, i32) {
    %c0_i32 = arith.constant 0 : i32
    %c0_i32_0 = arith.constant 0 : i32
    return %arg1, %c0_i32 : i32, i32
  }
  func.func @transform_3(%arg0: i32, %arg1: i32) -> (i32, i32) {
    %c0_i32 = arith.constant 0 : i32
    %c0_i32_0 = arith.constant 0 : i32
    %c0_i32_1 = arith.constant 0 : i32
    return %c0_i32, %c0_i32_0 : i32, i32
  }
  func.func @transform_4(%arg0: i32, %arg1: i32) -> (i32, i32, i32) {
    %c0_i32 = arith.constant 0 : i32
    %c0_i32_0 = arith.constant 0 : i32
    %c0_i32_1 = arith.constant 0 : i32
    return %arg0, %c0_i32, %c0_i32_0 : i32, i32, i32
  }
}

</mosaic_0001>

<bundles_post_ra>
// kernel: tpu_custom_call.1
= control target key start
LH: loop header
LB: loop body
LE: loop exit
PB: predicated region body
PF: predicated region fallthrough
CT: control target
= control target key end

     0   :  { %9 = vsyncpa [#allocation5], 0  ;;  %s1540_s0 = inlined_call_operand.hbm [shape: f32[2,8,128], index: 0, kind: input, shape index: {}]   ;;  %s1541_s1 = inlined_call_operand.hbm [shape: f32[128,256], index: 1, kind: input, shape index: {}]   ;;  %s1542_s2 = inlined_call_operand.hbm [shape: f32[128,128], index: 2, kind: input, shape index: {}]   ;;  %s1543_s3 = inlined_call_operand.vmem [shape: f32[8,16], index: 3, kind: input, shape index: {}]   ;;  %s1544_s4 = inlined_call_operand.hbm [shape: f32[2,8,128], index: 4, kind: output, shape index: {}]  }
   0x1   :  { %11 = vsyncpa [#allocation5 + $0x1], 0 }
   0x2   :  { %12 = vsyncpa [#allocation8], 0 }
   0x3   :  { %13 = vsyncpa [#allocation6], 0 }
   0x4   :  { %15 = vsyncpa [#allocation6 + $0x1], 0  ;;  %s1255_s15 = smov 0   ;;  %s1257_s16 = smov 0  }
   0x5   :  { %s1259_s17 = smov 0   ;;  %s1261_s18 = smov 0  }
   0x6   :  { %s1263_s19 = smov 0   ;;  %s1265_s20 = smov 0  }
   0x7 LB: > { %s740_s21 = sadd.s32 4294967295, %s1217_s20   ;;  %s741_s22 = sadd.s32 4294967294, %s1217_s20   ;;  %s1217_s20 = sphi %s1265_s20, %s21_s20   ;;  %s1213_s19 = sphi %s1263_s19, %s1566_s19   ;;  %s1209_s18 = sphi %s1261_s18, %s1565_s18   ;;  %s1205_s17 = sphi %s1259_s17, %s1564_s17   ;;  %s1201_s16 = sphi %s1257_s16, %s1563_s16   ;;  %s1197_s15 = sphi %s1255_s15, %s1562_s15  }
   0x8   : > { %p53_p0 = scmp.ne.s32.totalorder %s1201_s16, %s1197_s15  ;;  %p1289_p1 = scmp.eq.s32.totalorder %s740_s21, 0 }
   0x9   : > { %p1293_p2 = scmp.eq.s32.totalorder %s740_s21, 1  ;;  %p156_p3 = scmp.eq.s32.totalorder %s741_s22, 1 }
   0xa   : > { %s1549_s23 = scalar_select %p1289_p1, 1, 0 }
   0xb   : > { %p1299_p4 = por %p1289_p1, %p53_p0  ;;  %p742_p5 = scmp.ge.s32.totalorder %s1217_s20, 1 }
   0xc   : > { %p1304_p6 = por %p156_p3, %p53_p0  ;;  %p163_p7 = scmp.lt.s32.totalorder %s1217_s20, 3 }
   0xd   : > { %s1551_s25 = scalar_select %p1299_p4, 1, 0 }
   0xe   : > { %s1552_s26 = scalar_select %p1304_p6, 1, 0 }
   0xf   : > { %p1309_p8 = pnand %p742_p5, %p163_p7  ;;  %s1219_s28 = smov [#allocation7]  }
  0x10   : > { %s178_s29 = sshll.u32 %s1219_s28, 4  ;;  %s1220_s5 = smov [#allocation9]   ;;  %s1313_s29 = int_to_ptr.vmem [resolvable:$true] %s178_s29 }
  0x11   : > { %p967_p9 = pneg %p1309_p8  ;;  %s194_s6 = sshll.u32 %s1220_s5, 4  ;;  %s1324_s6 = int_to_ptr.vmem [resolvable:$true] %s194_s6 }
  0x12   : > { %s1045_s9 = scalar_lea.hbm %s1541_s1, 4096 }
  0x13   : > { %p1320_p11 = pnand %p967_p9, %p1289_p1  ;;  %p1046_p12 = scmp.ne.s32.totalorder %s1541_s1, %s1045_s9 }
  0x14   : > { %p1052_p5 = scmp.lt.u32.totalorder %s1045_s9, %s1541_s1 }
  0x15   : > { %p1047_p13 = pneg %p1320_p11 }
  0x17   : > { %p1048_p0 = pnand %p1047_p13, %p1046_p12 }
  0x19   : > { %p1049_p3 = pneg %p1048_p0 }
  0x1b   : > { %p1054_p7 = pnand %p1052_p5, %p1049_p3 }
  0x1d   : > { %1057 = shalt.err (!%p1054_p7)
}
  0x1e   : > { %s1058_s14 = scalar_lea.vmem %s1313_s29, 4096  ;;  %p1066_p1 = scmp.lt.s32.totalorder %s1313_s29, %s1313_s29 }
  0x1f   : > { %p1059_p9 = scmp.ne.s32.totalorder %s1313_s29, %s1058_s14  ;;  %p1067_p12 = scmp.lt.s32.totalorder %s1058_s14, %s1058_s14 }
  0x21   : > { %p1061_p10 = pnand %p1059_p9, %p1047_p13  ;;  %p1068_p0 = por %p1067_p12, %p1066_p1 }
  0x23   : > { %p1062_p6 = pneg %p1061_p10 }
  0x25   : > { %p1069_p4 = pnand %p1068_p0, %p1062_p6 }
  0x27   : > { %1072 = shalt.err (!%p1069_p4)
}
  0x28   : > { %s1221_s21 = smov 256   ;;  %s1222_s22 = smov 16  }
  0x29   : > { %970 = dma.hbm_to_vmem [thread:$0]  (!%p1320_p11), %s1541_s1, 4096, %s1313_s29, [#allocation8], %s1221_s21, %s1221_s21, %s1222_s22  }
  0x2a   : > { %s1073_s9 = scalar_lea.hbm %s1542_s2, 2048 }
  0x2b   : > { %p1074_p1 = scmp.ne.s32.totalorder %s1542_s2, %s1073_s9  ;;  %p1080_p10 = scmp.lt.u32.totalorder %s1073_s9, %s1542_s2 }
  0x2d   : > { %p1076_p4 = pnand %p1074_p1, %p1047_p13 }
  0x2f   : > { %p1077_p6 = pneg %p1076_p4 }
  0x31   : > { %p1082_p3 = pnand %p1080_p10, %p1077_p6 }
  0x33   : > { %1085 = shalt.err (!%p1082_p3)
}
  0x34   : > { %s1086_s29 = scalar_lea.vmem %s1324_s6, 2048  ;;  %p1094_p12 = scmp.lt.s32.totalorder %s1324_s6, %s1324_s6 }
  0x35   : > { %p1087_p5 = scmp.ne.s32.totalorder %s1324_s6, %s1086_s29  ;;  %p1095_p0 = scmp.lt.s32.totalorder %s1086_s29, %s1086_s29 }
  0x37   : > { %p1089_p7 = pnand %p1087_p5, %p1047_p13  ;;  %p1096_p1 = por %p1095_p0, %p1094_p12 }
  0x39   : > { %p1090_p9 = pneg %p1089_p7 }
  0x3b   : > { %p1097_p4 = pnand %p1096_p1, %p1090_p9 }
  0x3d   : > { %1100 = shalt.err (!%p1097_p4)
}
  0x3e   : > { %s1223_s14 = smov 128   ;;  %s1224_s21 = smov 8  }
  0x3f   : > { %973 = dma.hbm_to_vmem [thread:$0]  (!%p1320_p11), %s1542_s2, 2048, %s1324_s6, [#allocation8], %s1223_s14, %s1223_s14, %s1224_s21  }
  0x40   : > { %s33_s5 = sadd.s32 1, %s1213_s19  ;;  %s40_s7 = sadd.s32 1, %s1205_s17 }
  0x41   : > { %p35_p13 = scmp.ge.s32.totalorder %s33_s5, 2  ;;  %p47_p6 = scmp.ne.s32.totalorder %s1205_s17, %s1201_s16 }
  0x42   : > { %p48_p10 = scmp.eq.s32.totalorder %s1217_s20, 0  ;;  %p984_p3 = scmp.lt.s32.totalorder %s1217_s20, 2 }
  0x43   : > { %s1568_s5 = smov (%p35_p13, %s33_s5), 0  ;;  %p1388_p7 = por %p1293_p2, %p47_p6 }
  0x44   : > { %p49_p5 = por %p48_p10, %p47_p6  ;;  %s37_s30 = ssub.s32 %s1213_s19, %s1568_s5 }
  0x45   : > { %s1555_s8 = scalar_select %p1388_p7, 1, 0 }
  0x46   : > { %s211_s9 = sand.u32 1, %s1205_s17   ;;  %p38_p9 = scmp.eq.s32.totalorder %s37_s30, 0 }
  0x47   : > { %s746_s6 = sshll.u32 %s211_s9, 3  ;;  %s747_s10 = sshll.u32 %s1213_s19, 7 }
  0x48   : > { %s1397_s11 = scalar_select %p38_p9, %s1205_s17, %s40_s7  }
  0x49   : > { %s1402_s29 = scalar_lea.hbm %s1540_s0, %s747_s10  ;;  %s215_s24 = scalar_lea.vmem [#allocation4], %s746_s6 }
  0x4a   : > { %s222_s14 = sshll.u32 %s215_s24, 4  ;;  %p1406_p2 = pnand %p984_p3, %p49_p5  ;;  %s1410_s14 = int_to_ptr.vmem [resolvable:$true] %s222_s14 }
  0x4b   : > { %s212_s22 = scalar_lea.sflag [#allocation5], %s211_s9  ;;  %s1101_s28 = scalar_lea.hbm %s1402_s29, 128 }
  0x4c   : > { %p1102_p11 = scmp.ne.s32.totalorder %s1402_s29, %s1101_s28  ;;  %p1103_p12 = pneg %p1406_p2 }
  0x4d   : > { %s1106_s6 = scalar_lea.hbm %s1540_s0, 256  ;;  %p1107_p4 = scmp.lt.u32.totalorder %s1402_s29, %s1540_s0 }
  0x4e   : > { %p1104_p0 = pnand %p1103_p12, %p1102_p11  ;;  %p1108_p13 = scmp.lt.u32.totalorder %s1106_s6, %s1101_s28 }
  0x4f   : > { %p1110_p10 = scmp.lt.u32.totalorder %s1101_s28, %s1402_s29 }
  0x50   : > { %p1105_p1 = pneg %p1104_p0  ;;  %p1109_p6 = por %p1108_p13, %p1107_p4 }
  0x52   : > { %p1111_p3 = por %p1110_p10, %p1109_p6 }
  0x54   : > { %p1112_p5 = pnand %p1111_p3, %p1105_p1 }
  0x56   : > { %1115 = shalt.err (!%p1112_p5)
}
  0x57   : > { %s1116_s9 = scalar_lea.vmem %s1410_s14, 128  ;;  %s1225_s13 = smov [#allocation4]  }
  0x58   : > { %p1117_p9 = scmp.ne.s32.totalorder %s1410_s14, %s1116_s9  ;;  %s1121_s24 = sshll.u32 %s1225_s13, 4  ;;  %s1122_s24 = int_to_ptr.vmem [resolvable:$false] %s1121_s24 }
  0x59   : > { %s1123_s7 = scalar_lea.vmem %s1122_s24, 256  ;;  %p1124_p7 = scmp.lt.s32.totalorder %s1410_s14, %s1122_s24 }
  0x5a   : > { %p1119_p11 = pnand %p1117_p9, %p1103_p12  ;;  %p1125_p4 = scmp.lt.s32.totalorder %s1123_s7, %s1116_s9 }
  0x5c   : > { %p1120_p0 = pneg %p1119_p11  ;;  %p1126_p13 = por %p1125_p4, %p1124_p7 }
  0x5e   : > { %p1127_p6 = pnand %p1126_p13, %p1120_p0 }
  0x60   : > { %1130 = shalt.err (!%p1127_p6)
}
  0x61   : > { %977 = dma.hbm_to_vmem [thread:$0]  (!%p1406_p2), %s1402_s29, 128, %s1410_s14, %s212_s22  }
  0x62   : > { %231 = sbr.rel (%p1309_p8) target bundleno = 800 (0x320), region = 36  ;;  %s1440_s28 = sand.u32 (!%p1309_p8), 1, %s1201_s16  }
  0x63   : > { %s749_s30 = sshll.u32 (!%p1309_p8), %s1440_s28, 3  ;;  %s234_s6 = scalar_lea.sflag (!%p1309_p8), [#allocation5], %s1440_s28 }
  0x64   : > { %s1446_s10 = scalar_lea.vmem (!%p1309_p8), [#allocation4], %s749_s30  ;;  %p1557_p7 = scmp.ne.s32.totalorder (!%p1309_p8), %s1551_s25, 0 }
  0x69   : > { %1184 = dma.done.wait (%p1557_p7), %s234_s6, 128  }
  0x6a   : > { %1186 = vsyncadd (%p1557_p7), %s234_s6, 4294967168  ;;  %p1558_p2 = scmp.ne.s32.totalorder %s1549_s23, 0 }
  0x6c   : > { %1188 = dma.done.wait (%p1558_p2), [#allocation8], 6144  }
  0x6d   : > { %1190 = vsyncadd (%p1558_p2), [#allocation8], 4294961152  ;;  %v1226_v0 = vmov 0.0   ;;  %v1227_v1 = vmov 0.0|0.0   ;;  %v280_v2 = vld [vmem:[#allocation7 + $0x8] sm:$0xff]  ;;  %v282_v3 = vld [vmem:[#allocation7 + $0x18] sm:$0xff] }
  0x6e   : > { %375 = vmatprep.mubr.f32.mxu0 %v1226_v0  ;;  %904 = vmatprep.subr.bf16.mxu1 %v1227_v1  ;;  %v279_v4 = vld [vmem:[#allocation7] sm:$0xff]  ;;  %v872_v5 = vpack.c.bf16 %v282_v3, %v280_v2  ;;  %v281_v6 = vld [vmem:[#allocation7 + $0x10] sm:$0xff]  ;;  %v284_v7 = vld [vmem:[#allocation7 + $0x28] sm:$0xff]  ;;  %vm1228_vm0 = vmmov 0   ;;  %vm550_vm1 = vcmask 130048   ;;  %s269_s27 = scalar_lea.vmem [#allocation10], %s749_s30 }
  0x6f   : > { %v286_v8 = vld [vmem:[#allocation7 + $0x38] sm:$0xff]  ;;  %v874_v9 = vpack.c.bf16 %v281_v6, %v279_v4  ;;  %v283_v11 = vld [vmem:[#allocation7 + $0x20] sm:$0xff]  ;;  %v285_v12 = vld [vmem:[#allocation7 + $0x30] sm:$0xff]  ;;  %827 = vmatprep.mubr.msk.f32.mxu1 %vm1228_vm0, %v1226_v0  ;;  %s639_s29 = sshll.u32 %s269_s27, 4  ;;  %s755_s14 = sshll.u32 %s1209_s18, 7  ;;  %s1488_s29 = int_to_ptr.vmem [resolvable:$true] %s639_s29 }
  0x70   : > { %v876_v10 = vpack.c.bf16 %v286_v8, %v284_v7  ;;  %v288_v13 = vld [vmem:[#allocation7 + $0x48] sm:$0xff]  ;;  %873 = vmatprep.subr.bf16.mxu0 %v872_v5  ;;  %v290_v14 = vld [vmem:[#allocation7 + $0x58] sm:$0xff]  ;;  %v878_v15 = vpack.c.bf16 %v285_v12, %v283_v11  ;;  %v287_v17 = vld [vmem:[#allocation7 + $0x40] sm:$0xff]  ;;  %s1493_s12 = scalar_lea.hbm %s1544_s4, %s755_s14  ;;  %s626_s9 = scalar_lea.sflag [#allocation6], %s1440_s28 }
  0x71   : > { %875 = vmatpush1.bf16.msra.mxu0 %v874_v9  ;;  %v880_v16 = vpack.c.bf16 %v290_v14, %v288_v13  ;;  %v289_v18 = vld [vmem:[#allocation7 + $0x50] sm:$0xff]  ;;  %v292_v19 = vld [vmem:[#allocation7 + $0x68] sm:$0xff]  ;;  %v294_v20 = vld [vmem:[#allocation7 + $0x78] sm:$0xff]  ;;  %s1131_s13 = scalar_lea.vmem %s1488_s29, 128  ;;  %p1559_p12 = scmp.ne.s32.totalorder %s1555_s8, 0 }
  0x72   : > { %877 = vmatprep.subr.bf16.mxu0 %v876_v10  ;;  %v882_v21 = vpack.c.bf16 %v289_v18, %v287_v17  ;;  %v884_v22 = vpack.c.bf16 %v294_v20, %v292_v19  ;;  %v291_v23 = vld [vmem:[#allocation7 + $0x60] sm:$0xff]  ;;  %v293_v24 = vld [vmem:[#allocation7 + $0x70] sm:$0xff]  ;;  %v296_v25 = vld [vmem:[#allocation7 + $0x88] sm:$0xff]  ;;  %p1132_p8 = scmp.ne.s32.totalorder %s1488_s29, %s1131_s13  ;;  %s1229_s18 = smov [#allocation10]  }
  0x73   : > { %v298_v26 = vld [vmem:[#allocation7 + $0x98] sm:$0xff]  ;;  %v382_v27 = vld [vmem:[#allocation9] sm:$0xff]  ;;  %v383_v28 = vld [vmem:[#allocation9 + $0x8] sm:$0xff]  ;;  %v886_v30 = vpack.c.bf16 %v293_v24, %v291_v23  ;;  %s1135_s24 = sshll.u32 %s1229_s18, 4  ;;  %s1136_s24 = int_to_ptr.vmem [resolvable:$false] %s1135_s24 }
  0x74   : > { %v384_v29 = vld [vmem:[#allocation9 + $0x10] sm:$0xff]  ;;  %v1458_v31 = vpack.c.bf16 %v383_v28, %v382_v27  ;;  %v385_v32 = vld [vmem:[#allocation9 + $0x18] sm:$0xff]  ;;  %v888_v33 = vpack.c.bf16 %v298_v26, %v296_v25  ;;  %v295_v34 = vld [vmem:[#allocation7 + $0x80] sm:$0xff]  ;;  %p1133_p1 = pnand %p1132_p8, %p1559_p12  ;;  %s1137_s7 = scalar_lea.vmem %s1136_s24, 256 }
  0x75   : > { %879 = vmatpush1.bf16.msra.mxu0 %v878_v15  ;;  %v297_v35 = vld [vmem:[#allocation7 + $0x90] sm:$0xff]  ;;  %v300_v36 = vld [vmem:[#allocation7 + $0xa8] sm:$0xff]  ;;  %v302_v37 = vld [vmem:[#allocation7 + $0xb8] sm:$0xff]  ;;  %v908_v38 = vpack.c.bf16 %v385_v32, %v384_v29  ;;  %p1138_p3 = scmp.lt.s32.totalorder %s1488_s29, %s1136_s24  ;;  %p1139_p5 = scmp.lt.s32.totalorder %s1137_s7, %s1131_s13 }
  0x76   : > { %881 = vmatprep.subr.bf16.mxu0 %v880_v16  ;;  %906 = vmatpush3.bf16.msra.mxu1 %v1458_v31  ;;  %v386_v39 = vld [vmem:[#allocation9 + $0x20] sm:$0xff]  ;;  %v387_v40 = vld [vmem:[#allocation9 + $0x28] sm:$0xff]  ;;  %v890_v41 = vpack.c.bf16 %v297_v35, %v295_v34  ;;  %v892_v42 = vpack.c.bf16 %v302_v37, %v300_v36  ;;  %v301_v44 = vld [vmem:[#allocation7 + $0xb0] sm:$0xff]  ;;  %p1134_p10 = pneg %p1133_p1 }
  0x77   : > { %907 = vmatprep.subr.bf16.mxu1 %v1227_v1  ;;  %v299_v43 = vld [vmem:[#allocation7 + $0xa0] sm:$0xff]  ;;  %v304_v45 = vld [vmem:[#allocation7 + $0xc8] sm:$0xff]  ;;  %v306_v46 = vld [vmem:[#allocation7 + $0xd8] sm:$0xff]  ;;  %v911_v47 = vpack.c.bf16 %v387_v40, %v386_v39  ;;  %p1140_p9 = por %p1139_p5, %p1138_p3 }
  0x78   : > { %v388_v48 = vld [vmem:[#allocation9 + $0x30] sm:$0xff]  ;;  %v389_v49 = vld [vmem:[#allocation9 + $0x38] sm:$0xff]  ;;  %v894_v50 = vpack.c.bf16 %v301_v44, %v299_v43  ;;  %v896_v51 = vpack.c.bf16 %v306_v46, %v304_v45  ;;  %v303_v52 = vld [vmem:[#allocation7 + $0xc0] sm:$0xff] }
  0x79   : > { %883 = vmatpush1.bf16.msra.mxu0 %v882_v21  ;;  %v305_v53 = vld [vmem:[#allocation7 + $0xd0] sm:$0xff]  ;;  %v308_v54 = vld [vmem:[#allocation7 + $0xe8] sm:$0xff]  ;;  %v310_v55 = vld [vmem:[#allocation7 + $0xf8] sm:$0xff]  ;;  %v914_v56 = vpack.c.bf16 %v389_v49, %v388_v48  ;;  %p1141_p11 = pnand %p1140_p9, %p1134_p10 }
  0x7a   : > { %885 = vmatprep.subr.bf16.mxu0 %v884_v22  ;;  %909 = vmatpush3.bf16.msra.mxu1 %v908_v38  ;;  %v390_v57 = vld [vmem:[#allocation9 + $0x40] sm:$0xff]  ;;  %v391_v58 = vld [vmem:[#allocation9 + $0x48] sm:$0xff]  ;;  %v898_v59 = vpack.c.bf16 %v305_v53, %v303_v52  ;;  %v900_v60 = vpack.c.bf16 %v310_v55, %v308_v54  ;;  %v309_v62 = vld [vmem:[#allocation7 + $0xf0] sm:$0xff] }
  0x7b   : > { %910 = vmatprep.subr.bf16.mxu1 %v1227_v1  ;;  %v307_v61 = vld [vmem:[#allocation7 + $0xe0] sm:$0xff]  ;;  %v917_v63 = vpack.c.bf16 %v391_v58, %v390_v57  ;;  %v392_v2 = vld [vmem:[#allocation9 + $0x50] sm:$0xff]  ;;  %v393_v3 = vld [vmem:[#allocation9 + $0x58] sm:$0xff] }
  0x7c   : > { %v902_v4 = vpack.c.bf16 %v309_v62, %v307_v61  ;;  %v920_v5 = vpack.c.bf16 %v393_v3, %v392_v2  ;;  %v394_v6 = vld [vmem:[#allocation9 + $0x60] sm:$0xff]  ;;  %v395_v7 = vld [vmem:[#allocation9 + $0x68] sm:$0xff]  ;;  %v278_v8 = vld [vmem:[%s1446_s10] sm:$0xff] }
  0x7d   : > { %887 = vmatpush1.bf16.msra.mxu0 %v886_v30  ;;  %v923_v9 = vpack.c.bf16 %v395_v7, %v394_v6  ;;  %v396_v10 = vld [vmem:[#allocation9 + $0x70] sm:$0xff]  ;;  %v397_v11 = vld [vmem:[#allocation9 + $0x78] sm:$0xff] }
  0x7e   : > { %889 = vmatprep.subr.bf16.mxu0 %v888_v33  ;;  %912 = vmatpush3.bf16.msra.mxu1 %v911_v47  ;;  %v926_v12 = vpack.c.bf16 %v397_v11, %v396_v10  ;;  %v547_v19 = vld [vmem:[%s1543_s3] sm:$0xff] }
  0x7f   : > { %913 = vmatprep.subr.bf16.mxu1 %v1227_v1 }
  0x81   : > { %891 = vmatpush1.bf16.msra.mxu0 %v890_v41 }
  0x82   : > { %893 = vmatprep.subr.bf16.mxu0 %v892_v42  ;;  %915 = vmatpush3.bf16.msra.mxu1 %v914_v56 }
  0x83   : > { %916 = vmatprep.subr.bf16.mxu1 %v1227_v1 }
  0x85   : > { %895 = vmatpush1.bf16.msra.mxu0 %v894_v50 }
  0x86   : > { %897 = vmatprep.subr.bf16.mxu0 %v896_v51  ;;  %918 = vmatpush3.bf16.msra.mxu1 %v917_v63 }
  0x87   : > { %919 = vmatprep.subr.bf16.mxu1 %v1227_v1 }
  0x89   : > { %899 = vmatpush1.bf16.msra.mxu0 %v898_v59 }
  0x8a   : > { %901 = vmatprep.subr.bf16.mxu0 %v900_v60  ;;  %921 = vmatpush3.bf16.msra.mxu1 %v920_v5 }
  0x8b   : > { %922 = vmatprep.subr.bf16.mxu1 %v1227_v1 }
  0x8d   : > { %903 = vmatpush1.bf16.msra.mxu0 %v902_v4 }
  0x8e   : > { %928 = vmatprep.subr.bf16.mxu0 %v1227_v1  ;;  %924 = vmatpush3.bf16.msra.mxu1 %v923_v9 }
  0x8f   : > { %925 = vmatprep.subr.bf16.mxu1 %v1227_v1 }
  0x90   : > { %376 = vmatmul.mubr.f32.vlgmr.msra.gmra.mrb[0].mxu0 %v278_v8 }
  0x91   : > { %930 = vmatpush3.bf16.msra.mxu0 %v1458_v31  ;;  %862 = vmatprep.mubr.msk.f32.mxu0 %vm1228_vm0, %v1226_v0 }
  0x92   : > { %931 = vmatprep.subr.bf16.mxu0 %v1227_v1  ;;  %927 = vmatpush3.bf16.msra.mxu1 %v926_v12 }
  0x93   : > { %952 = vmatprep.subr.bf16.mxu1 %v1227_v1 }
  0x95   : > { %933 = vmatpush3.bf16.msra.mxu0 %v908_v38 }
  0x96   : > { %934 = vmatprep.subr.bf16.mxu0 %v1227_v1 }
  0x99   : > { %936 = vmatpush3.bf16.msra.mxu0 %v911_v47 }
  0x9a   : > { %937 = vmatprep.subr.bf16.mxu0 %v1227_v1 }
  0x9d   : > { %939 = vmatpush3.bf16.msra.mxu0 %v914_v56 }
  0x9e   : > { %940 = vmatprep.subr.bf16.mxu0 %v1227_v1 }
  0xa1   : > { %942 = vmatpush3.bf16.msra.mxu0 %v917_v63 }
  0xa2   : > { %943 = vmatprep.subr.bf16.mxu0 %v1227_v1 }
  0xa5   : > { %945 = vmatpush3.bf16.msra.mxu0 %v920_v5 }
  0xa6   : > { %946 = vmatprep.subr.bf16.mxu0 %v1227_v1 }
  0xa9   : > { %948 = vmatpush3.bf16.msra.mxu0 %v923_v9 }
  0xaa   : > { %949 = vmatprep.subr.bf16.mxu0 %v1227_v1 }
  0xad   : > { %951 = vmatpush3.bf16.msra.mxu0 %v926_v12 }
 0x163   : > { %v377_v13 = vpop.f32.mrb[0].mxu0 }
 0x164   : > { %v379_v14 = vpop.f32.mrb[1].mxu0  ;;  %828 = vmatmul.mubr.f32.vlgmr.msra.gmra.mrb[0].mxu1 %v377_v13 }
 0x165   : > { %863 = vmatmul.mubr.f32.vlgmr.msra.gmra.mrb[2].mxu0 %v379_v14  ;;  %869 = vmatprep.mubr.msk.f32.mxu1 %vm1228_vm0, %v1226_v0 }
 0x237   : > { %v465_v15 = vpop.f32.mrb[0].mxu1 }
 0x238   : > { %v829_v16 = vpop.f32.mrb[1].mxu1  ;;  %v538_v17 = vpop.f32.mrb[2].mxu0 }
 0x239   : > { %v953_v18 = vpack.c.bf16 %v538_v17, %v465_v15  ;;  %v864_v1 = vpop.f32.mrb[3].mxu0 }
 0x23b   : > { %954 = vmatpush3.bf16.msra.mxu1 %v953_v18 }
 0x23e   : > { %870 = vmatmul.mubr.msk.f32.vlgmr.msra.gmra.mrb[2].mxu1 %vm550_vm1, %v547_v19 }
 0x311   : > { %v620_v0 = vpop.f32.mrb[2].mxu1 }
 0x312   : > { %624 = vst [vmem:[%s269_s27] sm:$0xff] %v620_v0  ;;  %v871_v20 = vpop.f32.mrb[3].mxu1 }
 0x313   : > { %1144 = shalt.err (!%p1141_p11)
}
 0x314   : > { %s1145_s28 = scalar_lea.hbm %s1493_s12, 128  ;;  %s1149_s10 = scalar_lea.hbm %s1544_s4, 256 }
 0x315   : > { %p1146_p0 = scmp.ne.s32.totalorder %s1493_s12, %s1145_s28  ;;  %p1150_p6 = scmp.lt.u32.totalorder %s1493_s12, %s1544_s4 }
 0x316   : > { %p1151_p7 = scmp.lt.u32.totalorder %s1149_s10, %s1145_s28  ;;  %p1153_p8 = scmp.lt.u32.totalorder %s1145_s28, %s1493_s12 }
 0x317   : > { %p1147_p4 = pnand %p1146_p0, %p1559_p12 }
 0x318   : > { %p1152_p2 = por %p1151_p7, %p1150_p6 }
 0x319   : > { %p1148_p13 = pneg %p1147_p4 }
 0x31a   : > { %p1154_p1 = por %p1153_p8, %p1152_p2 }
 0x31c   : > { %p1155_p10 = pnand %p1154_p1, %p1148_p13 }
 0x31e   : > { %1158 = shalt.err (!%p1155_p10)
}
 0x31f   : > { %965 = dma.vmem_to_hbm [thread:$0]  (%p1559_p12), %s1488_s29, 128, %s1493_s12, %s626_s9  }
 0x320 PF: > { %s651_s27 = sand.u32 1, %s1197_s15   ;;  %p1560_p3 = scmp.ne.s32.totalorder %s1552_s26, 0 }
 0x321   : > { %p1561_p5 = scmp.ge.s32.totalorder %s1217_s20, 2  ;;  %s652_s14 = scalar_lea.sflag [#allocation6], %s651_s27 }
 0x323   : > { %p979_p9 = pnand %p1561_p5, %p1560_p3 }
 0x325   : > { %1192 = dma.done.wait (!%p979_p9), %s652_s14, 128  }
 0x326   : > { %1194 = vsyncadd (!%p979_p9), %s652_s14, 4294967168  ;;  %s21_s20 = sadd.s32 1, %s1217_s20   ;;  %s1562_s15 = smov %s1201_s16 }
 0x327   : > { %p18_p11 = scmp.ge.s32.totalorder %s21_s20, 4   ;;  %s1563_s16 = smov %s1205_s17 }
 0x328   : > { %s1564_s17 = smov %s1397_s11  ;;  %s1565_s18 = smov %s1213_s19 }
 0x329   : > { %s1566_s19 = smov %s1568_s5  ;;  %20 = sbr.rel (!%p18_p11) target bundleno = 7 (0x7), region = 99 }
 0x330   :  { %657 = vsyncpa [#allocation5], 1 }
 0x331   :  { %659 = vsyncpa [#allocation5 + $0x1], 1 }
 0x332   :  { %660 = vsyncpa [#allocation8], 1 }
 0x333   :  { %661 = vsyncpa [#allocation6], 1 }
 0x334   :  { %663 = vsyncpa [#allocation6 + $0x1], 1 }

</bundles_post_ra>
